<compile_context>
chip_gen: v6e
topology: v6e:2x2x1
jax: 0.10.0
libtpu: 0.0.40
codegen_flags: <defaults>
</compile_context>

<pallas_src>
import functools

import jax
import jax.numpy as jnp
from jax.experimental import pallas as pl
from jax.experimental.pallas import tpu as pltpu

_TRANSCENDENTAL_ACTS = ("gelu", "tanh", "sigmoid")
_LANE = 128


def _apply_activation(y, activation_function: str):
    """Activation applied inside the kernel in f32 (VPU/EUP)."""
    if activation_function == "relu":
        return jnp.maximum(y, 0.0)
    if activation_function == "gelu":
        # PyTorch nn.GELU default is the exact erf form.
        return jax.nn.gelu(y, approximate=False)
    if activation_function == "tanh":
        return jnp.tanh(y)
    if activation_function == "sigmoid":
        return jax.nn.sigmoid(y)
    if activation_function in ("identity", "linear", "none"):
        return y
    raise ValueError(f"unsupported activation: {activation_function}")


def _round_up(x, m):
    return ((x + m - 1) // m) * m


def _sublane_align(dtype):
    itemsize = jnp.dtype(dtype).itemsize
    if itemsize >= 4:
        return 8
    if itemsize == 2:
        return 16
    return 32


def _choose_tile(dim, max_tile, align, waste_tol=0.125):
    """Pick (tile, padded_dim) with tile % align == 0, padded_dim % tile == 0,
    padded_dim >= round_up(dim, align), over-pad bounded by waste_tol when possible."""
    max_tile = max(max_tile, align)
    dim_aligned = _round_up(max(dim, 1), align)
    if dim_aligned <= max_tile:
        return dim_aligned, dim_aligned
    best = None
    t = max_tile
    while t >= align:
        padded = _round_up(dim_aligned, t)
        waste = (padded - dim_aligned) / padded
        if best is None or waste < best[2]:
            best = (t, padded, waste)
        if waste <= waste_tol:
            return t, padded
        t //= 2
    return best[0], best[1]


# ----------------------------- kernels --------------------------------------


def _unitcoder_kernel_multi_k(x_ref, w_ref, b_ref, o_ref, acc_ref, *, activation_function):
    # x_ref: (tm, tk)  w_ref: (tk, tn)  b_ref: (1, tn)  o_ref: (tm, tn)
    # acc_ref: (tm, tn) f32 accumulator, resident across the K grid axis.
    k = pl.program_id(2)

    @pl.when(k == 0)
    def _init():
        acc_ref[...] = jnp.zeros_like(acc_ref)

    acc_ref[...] += jnp.dot(x_ref[...], w_ref[...], preferred_element_type=jnp.float32)

    @pl.when(k == pl.num_programs(2) - 1)
    def _finalize():
        y = acc_ref[...] + b_ref[...].astype(jnp.float32)
        o_ref[...] = _apply_activation(y, activation_function).astype(o_ref.dtype)


def _unitcoder_kernel_single_k(x_ref, w_ref, b_ref, o_ref, *, activation_function):
    # Whole reduction fits one tile: no accumulator scratch round trip.
    y = jnp.dot(x_ref[...], w_ref[...], preferred_element_type=jnp.float32)
    y = y + b_ref[...].astype(jnp.float32)
    o_ref[...] = _apply_activation(y, activation_function).astype(o_ref.dtype)


# ----------------------------- forward --------------------------------------


def _forward_prepared(x, w_t, bias2d, *, input_dim, output_dim, k_pad, n_pad,
                      tk, tn, activation_function, block_m, cast_to_bf16):
    """x: [..., input_dim]; w_t already transposed to [k_pad, n_pad] and padded."""
    assert x.shape[-1] == input_dim, "input_dim mismatch"
    lead_shape = x.shape[:-1]
    x2d = x.reshape(-1, input_dim)
    batch = x2d.shape[0]
    out_dtype = x.dtype

    if cast_to_bf16:
        x2d = x2d.astype(jnp.bfloat16)

    # Dtype-aware sublane alignment on the batch axis (input and output tiles).
    sub_m = max(_sublane_align(x2d.dtype), _sublane_align(out_dtype))
    tm, m_pad = _choose_tile(batch, block_m, sub_m)

    mb, nb, kb = m_pad // tm, n_pad // tn, k_pad // tk

    # Guarantee >= 2 blocks on a parallel axis when possible so both v7x
    # TensorCores get work (megacore sharding of "parallel" grid axes).
    if mb * nb == 1:
        if n_pad % (2 * _LANE) == 0:
            tn = n_pad // 2
            nb = 2
        elif m_pad % (2 * sub_m) == 0:
            tm = m_pad // 2
            mb = 2

    if (m_pad, k_pad) != (batch, input_dim):
        x2d = jnp.pad(x2d, ((0, m_pad - batch), (0, k_pad - input_dim)))

    itemsize_x = x2d.dtype.itemsize
    itemsize_w = w_t.dtype.itemsize
    itemsize_b = bias2d.dtype.itemsize
    itemsize_o = jnp.dtype(out_dtype).itemsize

    # bytes_accessed accounts for re-streaming: x read once per N block,
    # w / bias read once per M block, output written once.
    cost = pl.CostEstimate(
        flops=2 * m_pad * k_pad * n_pad,
        transcendentals=(m_pad * n_pad if activation_function in _TRANSCENDENTAL_ACTS else 0),
        bytes_accessed=(
            m_pad * k_pad * itemsize_x * nb
            + k_pad * n_pad * itemsize_w * mb
            + n_pad * itemsize_b * mb
            + m_pad * n_pad * itemsize_o
        ),
    )

    # VMEM budget: double-buffered inputs, double-buffered output, f32 scratch.
    vmem_bytes = (
        2 * (tm * tk * itemsize_x + tk * tn * itemsize_w + tn * itemsize_b)
        + 2 * tm * tn * itemsize_o
        + (0 if kb == 1 else tm * tn * 4)
    )
    vmem_limit = int(min(max(int(vmem_bytes * 1.5), 32 * 1024 * 1024), 100 * 1024 * 1024))

    if kb == 1:
        # Single-K specialization: drop the K axis and the accumulator scratch.
        kernel = functools.partial(
            _unitcoder_kernel_single_k, activation_function=activation_function)
        out_padded = pl.pallas_call(
            kernel,
            out_shape=jax.ShapeDtypeStruct((m_pad, n_pad), out_dtype),
            grid_spec=pltpu.PrefetchScalarGridSpec(
                num_scalar_prefetch=0,
                grid=(mb, nb),
                in_specs=[
                    pl.BlockSpec((tm, tk), lambda i, j: (i, 0)),   # x tile (M x K)
                    pl.BlockSpec((tk, tn), lambda i, j: (0, j)),   # w tile (K x N)
                    pl.BlockSpec((1, tn), lambda i, j: (0, j)),    # bias tile
                ],
                out_specs=pl.BlockSpec((tm, tn), lambda i, j: (i, j)),
            ),
            compiler_params=pltpu.CompilerParams(
                dimension_semantics=("parallel", "parallel"),
                vmem_limit_bytes=vmem_limit,
            ),
            cost_estimate=cost,
        )(x2d, w_t, bias2d)
    else:
        kernel = functools.partial(
            _unitcoder_kernel_multi_k, activation_function=activation_function)
        out_padded = pl.pallas_call(
            kernel,
            out_shape=jax.ShapeDtypeStruct((m_pad, n_pad), out_dtype),
            grid_spec=pltpu.PrefetchScalarGridSpec(
                num_scalar_prefetch=0,
                grid=(mb, nb, kb),
                in_specs=[
                    pl.BlockSpec((tm, tk), lambda i, j, k: (i, k)),   # x tile
                    pl.BlockSpec((tk, tn), lambda i, j, k: (k, j)),   # w tile (K x N)
                    pl.BlockSpec((1, tn), lambda i, j, k: (0, j)),    # bias tile
                ],
                out_specs=pl.BlockSpec((tm, tn), lambda i, j, k: (i, j)),
                scratch_shapes=[pltpu.VMEM((tm, tn), jnp.float32)],
            ),
            compiler_params=pltpu.CompilerParams(
                dimension_semantics=("parallel", "parallel", "arbitrary"),
                vmem_limit_bytes=vmem_limit,
            ),
            cost_estimate=cost,
        )(x2d, w_t, bias2d)

    if (m_pad, n_pad) != (batch, output_dim):
        out_padded = out_padded[:batch, :output_dim]
    return out_padded.reshape(*lead_shape, output_dim)


class UnitCoderPallas:
    """UnitCoder forward with the weight transpose/pad hoisted out of the call path."""

    def __init__(self, weight, bias, *, activation_function="relu",
                 block_m=512, block_n=1024, block_k=1024, cast_to_bf16=False):
        output_dim, input_dim = weight.shape
        assert bias.shape == (output_dim,)
        self.input_dim = int(input_dim)
        self.output_dim = int(output_dim)
        self.activation_function = activation_function
        self.block_m = block_m
        self.cast_to_bf16 = cast_to_bf16

        # K / N tiling + padding is batch-independent -> decided once here.
        self.tk, self.k_pad = _choose_tile(self.input_dim, block_k, _LANE)
        self.tn, self.n_pad = _choose_tile(self.output_dim, block_n, _LANE)

        # One-time transpose to [input_dim, output_dim] + pad to tile multiples.
        w_t = weight.T
        if (self.k_pad, self.n_pad) != (self.input_dim, self.output_dim):
            w_t = jnp.pad(w_t, ((0, self.k_pad - self.input_dim),
                                (0, self.n_pad - self.output_dim)))
        bias2d = bias.reshape(1, self.output_dim)
        if self.n_pad != self.output_dim:
            bias2d = jnp.pad(bias2d, ((0, 0), (0, self.n_pad - self.output_dim)))
        if cast_to_bf16:
            w_t = w_t.astype(jnp.bfloat16)
        self.w_t = w_t
        self.bias2d = bias2d

    def __call__(self, x):
        return _forward_prepared(
            x, self.w_t, self.bias2d,
            input_dim=self.input_dim, output_dim=self.output_dim,
            k_pad=self.k_pad, n_pad=self.n_pad, tk=self.tk, tn=self.tn,
            activation_function=self.activation_function,
            block_m=self.block_m, cast_to_bf16=self.cast_to_bf16)


def unit_coder_forward(x, weight, bias, *, activation_function="relu",
                       block_m=512, block_n=1024, block_k=1024, cast_to_bf16=False):
    """Convenience one-shot forward. For repeated calls with the same weights,
    build a UnitCoderPallas once so the weight transpose/pad is not re-done."""
    module = UnitCoderPallas(
        weight, bias, activation_function=activation_function,
        block_m=block_m, block_n=block_n, block_k=block_k, cast_to_bf16=cast_to_bf16)
    return module(x)


def _reference_forward(x, weight, bias, activation_function):
    y = x @ weight.T + bias
    return _apply_activation(y, activation_function)


if __name__ == "__main__":
    key = jax.random.PRNGKey(0)

    # Case 1: small, module-consistent shapes (batch=8, input_dim=32, output_dim=32).
    batch, input_dim, output_dim = 8, 32, 32
    kx, kw, kb, key = jax.random.split(key, 4)
    x = jax.random.normal(kx, (batch, input_dim), dtype=jnp.float32)
    bound = 1.0 / (input_dim ** 0.5)
    weight = jax.random.uniform(kw, (output_dim, input_dim), jnp.float32, -bound, bound)
    bias = jax.random.uniform(kb, (output_dim,), jnp.float32, -bound, bound)

    coder = UnitCoderPallas(weight, bias, activation_function="relu")
    out = jax.block_until_ready(coder(x))          # prepared weights, call 1
    out2 = jax.block_until_ready(coder(x))         # reuse prepared weights, call 2
    ref = _reference_forward(x, weight, bias, "relu")
    assert out.shape == (batch, output_dim)
    assert jnp.allclose(out, ref, atol=1e-5, rtol=1e-5), "mismatch vs reference (relu)"
    assert jnp.allclose(out2, ref, atol=1e-5, rtol=1e-5), "mismatch on repeated call"

    # Case 2: ragged / non-aligned shapes, 3-D input, transcendental activation
    # (exercises minimal padding, leading-dim flatten, single-K fast path).
    b0, b1, in2, out_dim2 = 2, 5, 48, 40
    kx2, kw2, kb2, key = jax.random.split(key, 4)
    x2 = jax.random.normal(kx2, (b0, b1, in2), dtype=jnp.float32)
    bound2 = 1.0 / (in2 ** 0.5)
    w2 = jax.random.uniform(kw2, (out_dim2, in2), jnp.float32, -bound2, bound2)
    b2 = jax.random.uniform(kb2, (out_dim2,), jnp.float32, -bound2, bound2)

    out_t = jax.block_until_ready(unit_coder_forward(x2, w2, b2, activation_function="tanh"))
    ref_t = _reference_forward(x2, w2, b2, "tanh")
    assert out_t.shape == (b0, b1, out_dim2)
    assert jnp.allclose(out_t, ref_t, atol=1e-5, rtol=1e-5), "mismatch vs reference (tanh)"

    # Case 3: gelu (exact erf form, matching PyTorch nn.GELU default).
    batch3, in3, out3 = 6, 24, 24
    kx3, kw3, kb3, key = jax.random.split(key, 4)
    x3 = jax.random.normal(kx3, (batch3, in3), dtype=jnp.float32)
    bound3 = 1.0 / (in3 ** 0.5)
    w3 = jax.random.uniform(kw3, (out3, in3), jnp.float32, -bound3, bound3)
    b3 = jax.random.uniform(kb3, (out3,), jnp.float32, -bound3, bound3)

    out_g = jax.block_until_ready(unit_coder_forward(x3, w3, b3, activation_function="gelu"))
    ref_g = _reference_forward(x3, w3, b3, "gelu")
    assert out_g.shape == (batch3, out3)
    assert jnp.allclose(out_g, ref_g, atol=1e-5, rtol=1e-5), "mismatch vs reference (gelu)"

    print("KERNEL_OK")
</pallas_src>

<mosaic_0001>
module attributes {stable_mosaic.version = 11 : i64} {
  func.func @_unitcoder_kernel_single_k(%arg0: i32, %arg1: i32, %arg2: memref<8x128xf32, #tpu.memory_space<vmem>>, %arg3: memref<128x128xf32, #tpu.memory_space<vmem>>, %arg4: memref<1x128xf32, #tpu.memory_space<vmem>>, %arg5: memref<8x128xf32, #tpu.memory_space<vmem>>) attributes {dimension_semantics = [#tpu.dimension_semantics<parallel>, #tpu.dimension_semantics<parallel>], iteration_bounds = array<i64: 1, 1>, scalar_prefetch = 0 : i64, scratch_operands = 0 : i64, tpu.core_type = #tpu.core_type<tc>, window_params = [{transform_indices = @transform_0, window_bounds = array<i64: 8, 128>}, {transform_indices = @transform_1, window_bounds = array<i64: 128, 128>}, {transform_indices = @transform_2, window_bounds = array<i64: 1, 128>}, {transform_indices = @transform_3, window_bounds = array<i64: 8, 128>}]} {
    %c0 = arith.constant 0 : index
    %c0_0 = arith.constant 0 : index
    %0 = vector.load %arg2[%c0, %c0_0] : memref<8x128xf32, #tpu.memory_space<vmem>>, vector<8x128xf32>
    %c0_1 = arith.constant 0 : index
    %c0_2 = arith.constant 0 : index
    %1 = vector.load %arg3[%c0_1, %c0_2] : memref<128x128xf32, #tpu.memory_space<vmem>>, vector<128x128xf32>
    %cst = arith.constant dense<0.000000e+00> : vector<8x128xf32>
    %2 = tpu.matmul %0, %1, %cst {dimension_numbers = #tpu.dot_dimension_numbers<[1], [0], [0], [1], [0, 0, 1, 1], [], []>} : vector<8x128xf32>, vector<128x128xf32>, vector<8x128xf32> -> vector<8x128xf32>
    %c0_3 = arith.constant 0 : index
    %c0_4 = arith.constant 0 : index
    %3 = vector.load %arg4[%c0_3, %c0_4] : memref<1x128xf32, #tpu.memory_space<vmem>>, vector<1x128xf32>
    %4 = vector.broadcast %3 : vector<1x128xf32> to vector<8x128xf32>
    %5 = arith.addf %2, %4 : vector<8x128xf32>
    %cst_5 = arith.constant 0.000000e+00 : f32
    %6 = vector.broadcast %cst_5 : f32 to vector<8x128xf32>
    %7 = arith.maximumf %5, %6 : vector<8x128xf32>
    %c0_6 = arith.constant 0 : index
    %c0_7 = arith.constant 0 : index
    %8 = vector.load %arg5[%c0_6, %c0_7] : memref<8x128xf32, #tpu.memory_space<vmem>>, vector<8x128xf32>
    tpu.vector_store %arg5[%c0_6, %c0_7], %7 {strides = array<i32>} : memref<8x128xf32, #tpu.memory_space<vmem>>, vector<8x128xf32>,
    return
  }
  func.func @transform_0(%arg0: i32, %arg1: i32) -> (i32, i32) {
    %c0_i32 = arith.constant 0 : i32
    %c0_i32_0 = arith.constant 0 : i32
    return %arg0, %c0_i32 : i32, i32
  }
  func.func @transform_1(%arg0: i32, %arg1: i32) -> (i32, i32) {
    %c0_i32 = arith.constant 0 : i32
    %c0_i32_0 = arith.constant 0 : i32
    return %c0_i32, %arg1 : i32, i32
  }
  func.func @transform_2(%arg0: i32, %arg1: i32) -> (i32, i32) {
    %c0_i32 = arith.constant 0 : i32
    %c0_i32_0 = arith.constant 0 : i32
    return %c0_i32, %arg1 : i32, i32
  }
  func.func @transform_3(%arg0: i32, %arg1: i32) -> (i32, i32) {
    %c0_i32 = arith.constant 0 : i32
    return %arg0, %arg1 : i32, i32
  }
}

</mosaic_0001>

<bundles_post_ra>
// kernel: tpu_custom_call.1
= control target key start
LH: loop header
LB: loop body
LE: loop exit
PB: predicated region body
PF: predicated region fallthrough
CT: control target
= control target key end

     0   :  { %8 = vsyncpa [#allocation3], 0  ;;  %s318_s0 = inlined_call_operand.hbm [shape: f32[8,128], index: 0, kind: input, shape index: {}]   ;;  %s319_s1 = inlined_call_operand.hbm [shape: f32[128,128], index: 1, kind: input, shape index: {}]   ;;  %s320_s2 = inlined_call_operand.vmem [shape: f32[1,128], index: 2, kind: input, shape index: {}]   ;;  %s321_s3 = inlined_call_operand.hbm [shape: f32[8,128], index: 3, kind: output, shape index: {}]  }
   0x1   :  { %9 = vsyncpa [#allocation6], 0 }
   0x2   :  { %10 = vsyncpa [#allocation4], 0  ;;  %s279_s12 = smov [#allocation2]   ;;  %s280_s14 = smov [#allocation5]  }
   0x3   :  { %s17_s13 = sshll.u32 %s279_s12, 4  ;;  %s26_s15 = sshll.u32 %s280_s14, 4  ;;  %s18_s13 = int_to_ptr.vmem [resolvable:$true] %s17_s13  ;;  %s27_s15 = int_to_ptr.vmem [resolvable:$true] %s26_s15 }
   0x4   :  { %s221_s16 = scalar_lea.vmem %s18_s13, 128  ;;  %p226_p1 = scmp.lt.s32.totalorder %s18_s13, %s18_s13 }
   0x5   :  { %p222_p0 = scmp.ne.s32.totalorder %s18_s13, %s221_s16  ;;  %p227_p2 = scmp.lt.s32.totalorder %s221_s16, %s221_s16 }
   0x7   :  { %p228_p3 = por %p227_p2, %p226_p1 }
   0x9   :  { %p229_p4 = pnand %p228_p3, %p222_p0 }
   0xb   :  { %232 = shalt.err (!%p229_p4)
}
   0xc   :  { %20 = dma.hbm_to_vmem [thread:$0]  %s318_s0, 128, %s18_s13, [#allocation3]  }
   0xd   :  { %s241_s19 = scalar_lea.vmem %s27_s15, 2048  ;;  %p246_p6 = scmp.lt.s32.totalorder %s27_s15, %s27_s15 }
   0xe   :  { %p242_p5 = scmp.ne.s32.totalorder %s27_s15, %s241_s19  ;;  %p247_p7 = scmp.lt.s32.totalorder %s241_s19, %s241_s19 }
  0x10   :  { %p248_p8 = por %p247_p7, %p246_p6 }
  0x12   :  { %p249_p9 = pnand %p248_p8, %p242_p5 }
  0x14   :  { %252 = shalt.err (!%p249_p9)
}
  0x15   :  { %s281_s20 = smov 128   ;;  %s282_s21 = smov 8  }
  0x16   :  { %32 = dma.hbm_to_vmem [thread:$0]  %s319_s1, 2048, %s27_s15, [#allocation6], %s281_s20, %s281_s20, %s282_s21  }
  0x17   :  { %273 = dma.done.wait [#allocation3], 128  }
  0x18   :  { %274 = vsyncadd [#allocation3], 4294967168 }
  0x19   :  { %275 = dma.done.wait [#allocation6], 2048  }
  0x1a   :  { %276 = vsyncadd [#allocation6], 4294965248  ;;  %v283_v0 = vmov 0.0   ;;  %vm284_vm0 = vmmov 0   ;;  %v57_v1 = vld [vmem:[#allocation5 + $0x78] sm:$0xff]  ;;  %v56_v2 = vld [vmem:[#allocation5 + $0x70] sm:$0xff] }
  0x1b   :  { %171 = vmatprep.subr.mxu0 %v283_v0  ;;  %203 = vmatprep.mubr.msk.f32.mxu0 %vm284_vm0, %v283_v0  ;;  %v55_v3 = vld [vmem:[#allocation5 + $0x68] sm:$0xff]  ;;  %v54_v4 = vld [vmem:[#allocation5 + $0x60] sm:$0xff]  ;;  %v53_v5 = vld [vmem:[#allocation5 + $0x58] sm:$0xff]  ;;  %s285_s24 = smov [#allocation7]  }
  0x1c   :  { %172 = vmatpush3.msra.mxu0 %v57_v1  ;;  %v52_v6 = vld [vmem:[#allocation5 + $0x50] sm:$0xff]  ;;  %v51_v7 = vld [vmem:[#allocation5 + $0x48] sm:$0xff]  ;;  %v50_v8 = vld [vmem:[#allocation5 + $0x40] sm:$0xff]  ;;  %s143_s25 = sshll.u32 %s285_s24, 4  ;;  %s144_s25 = int_to_ptr.vmem [resolvable:$true] %s143_s25 }
  0x1d   :  { %173 = vmatprep.subr.mxu0 %v283_v0  ;;  %v49_v9 = vld [vmem:[#allocation5 + $0x38] sm:$0xff]  ;;  %v48_v10 = vld [vmem:[#allocation5 + $0x30] sm:$0xff]  ;;  %v47_v11 = vld [vmem:[#allocation5 + $0x28] sm:$0xff]  ;;  %s253_s26 = scalar_lea.vmem %s144_s25, 128  ;;  %p258_p11 = scmp.lt.s32.totalorder %s144_s25, %s144_s25 }
  0x1e   :  { %174 = vmatpush3.msra.mxu0 %v56_v2  ;;  %v46_v12 = vld [vmem:[#allocation5 + $0x20] sm:$0xff]  ;;  %v45_v13 = vld [vmem:[#allocation5 + $0x18] sm:$0xff]  ;;  %v44_v14 = vld [vmem:[#allocation5 + $0x10] sm:$0xff]  ;;  %p254_p10 = scmp.ne.s32.totalorder %s144_s25, %s253_s26  ;;  %p259_p12 = scmp.lt.s32.totalorder %s253_s26, %s253_s26 }
  0x1f   :  { %175 = vmatprep.subr.mxu0 %v283_v0  ;;  %v43_v15 = vld [vmem:[#allocation5 + $0x8] sm:$0xff]  ;;  %v42_v16 = vld [vmem:[#allocation5] sm:$0xff]  ;;  %v41_v17 = vld [vmem:[#allocation2] sm:$0xff] }
  0x20   :  { %176 = vmatpush3.msra.mxu0 %v55_v3  ;;  %v153_v18 = vld [vmem:[%s320_s2] ss:$0 sm:$0xff]  ;;  %p260_p13 = por %p259_p12, %p258_p11 }
  0x21   :  { %177 = vmatprep.subr.mxu0 %v283_v0 }
  0x22   :  { %178 = vmatpush3.msra.mxu0 %v54_v4  ;;  %p261_p0 = pnand %p260_p13, %p254_p10 }
  0x23   :  { %179 = vmatprep.subr.mxu0 %v283_v0 }
  0x24   :  { %180 = vmatpush3.msra.mxu0 %v53_v5 }
  0x25   :  { %181 = vmatprep.subr.mxu0 %v283_v0 }
  0x26   :  { %182 = vmatpush3.msra.mxu0 %v52_v6 }
  0x27   :  { %183 = vmatprep.subr.mxu0 %v283_v0 }
  0x28   :  { %184 = vmatpush3.msra.mxu0 %v51_v7 }
  0x29   :  { %185 = vmatprep.subr.mxu0 %v283_v0 }
  0x2a   :  { %186 = vmatpush3.msra.mxu0 %v50_v8 }
  0x2b   :  { %187 = vmatprep.subr.mxu0 %v283_v0 }
  0x2c   :  { %188 = vmatpush3.msra.mxu0 %v49_v9 }
  0x2d   :  { %189 = vmatprep.subr.mxu0 %v283_v0 }
  0x2e   :  { %190 = vmatpush3.msra.mxu0 %v48_v10 }
  0x2f   :  { %191 = vmatprep.subr.mxu0 %v283_v0 }
  0x30   :  { %192 = vmatpush3.msra.mxu0 %v47_v11 }
  0x31   :  { %193 = vmatprep.subr.mxu0 %v283_v0 }
  0x32   :  { %194 = vmatpush3.msra.mxu0 %v46_v12 }
  0x33   :  { %195 = vmatprep.subr.mxu0 %v283_v0 }
  0x34   :  { %196 = vmatpush3.msra.mxu0 %v45_v13 }
  0x35   :  { %197 = vmatprep.subr.mxu0 %v283_v0 }
  0x36   :  { %198 = vmatpush3.msra.mxu0 %v44_v14 }
  0x37   :  { %199 = vmatprep.subr.mxu0 %v283_v0 }
  0x38   :  { %200 = vmatpush3.msra.mxu0 %v43_v15 }
  0x39   :  { %201 = vmatprep.subr.mxu0 %v283_v0 }
  0x3a   :  { %202 = vmatpush3.msra.mxu0 %v42_v16 }
  0x3b   :  { %204 = vmatmul.mubr.f32.vlgmr.msra.gmra.mxu0 %v41_v17 }
  0xfb   :  { %v131_v19 = vpop.f32.mrf.mxu0 }
  0xfc   :  { %v132_v20 = vadd.f32 %v153_v18, %v131_v19 }
  0xfd   :  { %v205_v21 = vpop.f32.mrf.mxu0 }
  0xfe   :  { %v135_v22 = vmax.f32 %v132_v20, 0.0 }
 0x100   :  { %136 = vst [vmem:[#allocation7] sm:$0xff] %v135_v22 }
 0x101   :  { %264 = shalt.err (!%p261_p0)
}
 0x102   :  { %146 = dma.vmem_to_hbm [thread:$0]  %s144_s25, 128, %s321_s3, [#allocation4]  }
 0x103   :  { %277 = dma.done.wait [#allocation4], 128  }
 0x104   :  { %278 = vsyncadd [#allocation4], 4294967168 }
 0x105   :  { %150 = vsyncpa [#allocation3], 1 }
 0x106   :  { %151 = vsyncpa [#allocation6], 1 }
 0x107   :  { %152 = vsyncpa [#allocation4], 1 }

</bundles_post_ra>
